<compile_context>
chip_gen: v7x
topology: tpu7x:2x2x1
jax: 0.10.0
libtpu: 0.0.40
codegen_flags: <defaults>
</compile_context>

<pallas_src>
import functools
import math

import jax
import jax.numpy as jnp
from jax.experimental import pallas as pl
from jax.experimental.pallas import tpu as pltpu

_VMEM_LIMIT = 32 * 1024 * 1024  # safe on v5e/v6e/v7x


# ----------------------------- tiling helpers ------------------------------

def _pick_tile(dim, candidates=(512, 256, 128)):
    """Largest candidate that evenly divides `dim`, else the full dim."""
    for c in candidates:
        if dim >= c and dim % c == 0:
            return c
    return dim


def _pick_group(bh, bytes_per_slice, budget=2 * 1024 * 1024):
    """Number of (batch,head) slices per grid step, ~budget bytes of blocks per step."""
    g = max(1, budget // max(bytes_per_slice, 1))
    g = min(g, bh)
    while bh % g:
        g -= 1
    return g


# ----------------------------- Pallas kernels ------------------------------

def _linear_kernel(x_ref, w_ref, b_ref, o_ref):
    # y = x @ W + b   (W stored as (Din, Dout)); f32 accumulation on the MXU.
    acc = jnp.dot(x_ref[...], w_ref[...], preferred_element_type=jnp.float32)
    o_ref[...] = (acc + b_ref[...].astype(jnp.float32)).astype(o_ref.dtype)


def linear(x, w, b):
    """x: (N, Din), w: (Din, Dout), b: (Dout,) -> (N, Dout). Tiled over N and Dout."""
    N, Din = x.shape
    Dout = w.shape[1]
    tm = _pick_tile(N)
    tn = _pick_tile(Dout)
    grid = (N // tm, Dout // tn)
    return pl.pallas_call(
        _linear_kernel,
        out_shape=jax.ShapeDtypeStruct((N, Dout), x.dtype),
        grid=grid,
        in_specs=[
            pl.BlockSpec((tm, Din), lambda i, j: (i, 0)),
            pl.BlockSpec((Din, tn), lambda i, j: (0, j)),
            pl.BlockSpec((1, tn), lambda i, j: (0, j)),
        ],
        out_specs=pl.BlockSpec((tm, tn), lambda i, j: (i, j)),
        compiler_params=pltpu.CompilerParams(
            dimension_semantics=("parallel", "parallel"),
            vmem_limit_bytes=_VMEM_LIMIT,
        ),
    )(x, w, b.reshape(1, Dout))


def _attn_body(q_ref, k_ref, v_ref, *, scale):
    """Shared attention math for one (G, TQ, S) block. Returns (probs_f32, out_f32)."""
    q = q_ref[...] * scale                 # fold scale into q (keeps input dtype)
    k = k_ref[...]
    v = v_ref[...]
    # scores[g, l, s] = sum_e q[g, l, e] * k[g, s, e]  -- MXU, f32 accumulate
    scores = jnp.einsum("gld,gsd->gls", q, k, preferred_element_type=jnp.float32)
    m = jnp.max(scores, axis=-1, keepdims=True)
    p = jnp.exp(scores - m)
    denom = jnp.sum(p, axis=-1, keepdims=True)
    inv = pl.reciprocal(denom, approx=True)       # EUP slot, frees VALU
    a = p * inv
    out = jnp.einsum("gls,gsd->gld", a.astype(v.dtype), v,
                     preferred_element_type=jnp.float32)
    return a, out


def _attn_kernel_with_probs(q_ref, k_ref, v_ref, o_ref, a_ref, *, scale):
    a, out = _attn_body(q_ref, k_ref, v_ref, scale=scale)
    a_ref[...] = a.astype(a_ref.dtype)
    o_ref[...] = out.astype(o_ref.dtype)


def _attn_kernel_no_probs(q_ref, k_ref, v_ref, o_ref, *, scale):
    _, out = _attn_body(q_ref, k_ref, v_ref, scale=scale)
    o_ref[...] = out.astype(o_ref.dtype)


def full_attention(qh, kh, vh, scale, *, return_attn=True):
    """qh: (BH, L, E), kh: (BH, S, E), vh: (BH, S, D).

    Returns ((BH, L, D), (BH, L, S) or None).
    Grid: (head-groups, query tiles); both axes parallel (megacore-friendly).
    """
    BH, L, E = qh.shape
    _, S, D = vh.shape

    tq = _pick_tile(L)  # query-axis tile (full L for short sequences)
    # rough per-slice VMEM footprint (f32 worst case, scores counted twice for exp)
    bytes_per_slice = 4 * (tq * E + S * E + S * D + tq * D + 2 * tq * S)
    G = _pick_group(BH, bytes_per_slice)
    grid = (BH // G, L // tq)

    in_specs = [
        pl.BlockSpec((G, tq, E), lambda g, l: (g, l, 0)),
        pl.BlockSpec((G, S, E), lambda g, l: (g, 0, 0)),
        pl.BlockSpec((G, S, D), lambda g, l: (g, 0, 0)),
    ]
    cp = pltpu.CompilerParams(
        dimension_semantics=("parallel", "parallel"),
        vmem_limit_bytes=_VMEM_LIMIT,
    )

    if return_attn:
        kernel = functools.partial(_attn_kernel_with_probs, scale=scale)
        out, attn = pl.pallas_call(
            kernel,
            out_shape=(
                jax.ShapeDtypeStruct((BH, L, D), qh.dtype),
                jax.ShapeDtypeStruct((BH, L, S), qh.dtype),  # attn in input dtype
            ),
            grid=grid,
            in_specs=in_specs,
            out_specs=(
                pl.BlockSpec((G, tq, D), lambda g, l: (g, l, 0)),
                pl.BlockSpec((G, tq, S), lambda g, l: (g, l, 0)),
            ),
            compiler_params=cp,
        )(qh, kh, vh)
        return out, attn

    kernel = functools.partial(_attn_kernel_no_probs, scale=scale)
    out = pl.pallas_call(
        kernel,
        out_shape=jax.ShapeDtypeStruct((BH, L, D), qh.dtype),
        grid=grid,
        in_specs=in_specs,
        out_specs=pl.BlockSpec((G, tq, D), lambda g, l: (g, l, 0)),
        compiler_params=cp,
    )(qh, kh, vh)
    return out, None


# ------------------------------ layer wrapper -------------------------------

def init_attention_layer_params(key, d_model, n_heads, d_keys=None, d_values=None):
    d_keys = d_keys or d_model // n_heads
    d_values = d_values or d_model // n_heads

    def lin_init(k, fan_in, fan_out):
        kw, kb = jax.random.split(k)
        bound = 1.0 / math.sqrt(fan_in)
        # weight stored pre-transposed: (fan_in, fan_out)   (PyTorch is (out, in))
        w = jax.random.uniform(kw, (fan_in, fan_out), jnp.float32, -bound, bound)
        b = jax.random.uniform(kb, (fan_out,), jnp.float32, -bound, bound)
        return w, b

    kq, kk, kv, ko = jax.random.split(key, 4)
    wq, bq = lin_init(kq, d_model, d_keys * n_heads)
    wk, bk = lin_init(kk, d_model, d_keys * n_heads)
    wv, bv = lin_init(kv, d_model, d_values * n_heads)
    wo, bo = lin_init(ko, d_values * n_heads, d_model)
    return dict(wq=wq, bq=bq, wk=wk, bk=bk, wv=wv, bv=bv, wo=wo, bo=bo,
                n_heads=n_heads, d_keys=d_keys, d_values=d_values)


def attention_layer_forward(params, queries, keys, values, attn_mask=None,
                            mix=False, output_attention=True):
    B, L, d_model = queries.shape
    _, S, _ = keys.shape
    H = params["n_heads"]
    dk = params["d_keys"]
    dv = params["d_values"]

    # projections (tiled Pallas matmul kernels)
    q = linear(queries.reshape(B * L, d_model), params["wq"], params["bq"]).reshape(B, L, H, dk)
    k = linear(keys.reshape(B * S, d_model), params["wk"], params["bk"]).reshape(B, S, H, dk)
    v = linear(values.reshape(B * S, d_model), params["wv"], params["bv"]).reshape(B, S, H, dv)

    # (B, L, H, d) -> (B*H, L, d)
    qh = q.transpose(0, 2, 1, 3).reshape(B * H, L, dk)
    kh = k.transpose(0, 2, 1, 3).reshape(B * H, S, dk)
    vh = v.transpose(0, 2, 1, 3).reshape(B * H, S, dv)

    scale = 1.0 / math.sqrt(dk)
    out_bh, attn_bh = full_attention(qh, kh, vh, scale, return_attn=output_attention)

    attn = attn_bh.reshape(B, H, L, S) if output_attention else None
    out = out_bh.reshape(B, H, L, dv)
    if mix:
        # PyTorch: out.transpose(2,1).contiguous().view(B, L, -1) on a (B,L,H,D) tensor
        out_flat = out.reshape(B, L, H * dv)
    else:
        out_flat = out.transpose(0, 2, 1, 3).reshape(B, L, H * dv)

    y = linear(out_flat.reshape(B * L, H * dv), params["wo"], params["bo"]).reshape(B, L, d_model)
    return y, attn


# --------------------------- pure-JAX reference ------------------------------

def _reference_forward(params, queries, keys, values, mix=False):
    B, L, d_model = queries.shape
    _, S, _ = keys.shape
    H, dk, dv = params["n_heads"], params["d_keys"], params["d_values"]
    q = (queries.reshape(B * L, d_model) @ params["wq"] + params["bq"]).reshape(B, L, H, dk)
    k = (keys.reshape(B * S, d_model) @ params["wk"] + params["bk"]).reshape(B, S, H, dk)
    v = (values.reshape(B * S, d_model) @ params["wv"] + params["bv"]).reshape(B, S, H, dv)
    scores = jnp.einsum("blhe,bshe->bhls", q, k) / math.sqrt(dk)
    attn = jax.nn.softmax(scores, axis=-1)
    out = jnp.einsum("bhls,bshd->blhd", attn, v)
    if mix:
        out = out.transpose(0, 2, 1, 3)
    out = out.reshape(B, L, H * dv)
    y = (out.reshape(B * L, H * dv) @ params["wo"] + params["bo"]).reshape(B, L, d_model)
    return y, attn


# --------------------------------- demo -------------------------------------

if __name__ == "__main__":
    B, L, S = 2, 8, 8
    d_model, n_heads = 32, 4

    key = jax.random.PRNGKey(0)
    kp, kq, kk, kv = jax.random.split(key, 4)

    params = init_attention_layer_params(kp, d_model, n_heads)
    queries = jax.random.normal(kq, (B, L, d_model), jnp.float32)
    keys = jax.random.normal(kk, (B, S, d_model), jnp.float32)
    values = jax.random.normal(kv, (B, S, d_model), jnp.float32)

    out, attn = attention_layer_forward(params, queries, keys, values,
                                        attn_mask=None, output_attention=True)
    jax.block_until_ready((out, attn))

    assert out.shape == (B, L, d_model)
    assert attn.shape == (B, n_heads, L, S)

    # compare against pure-JAX reference (tolerance covers approx reciprocal)
    ref_out, ref_attn = _reference_forward(params, queries, keys, values)
    assert bool(jnp.allclose(out, ref_out, rtol=5e-3, atol=5e-3))
    assert bool(jnp.allclose(attn, ref_attn, rtol=5e-3, atol=5e-3))
    assert bool(jnp.allclose(jnp.sum(attn, axis=-1), 1.0, atol=5e-3))

    # also exercise the flash-style path with no attention-weights writeback
    out_noattn, none_attn = attention_layer_forward(params, queries, keys, values,
                                                    attn_mask=None, output_attention=False)
    jax.block_until_ready(out_noattn)
    assert none_attn is None
    assert bool(jnp.allclose(out_noattn, ref_out, rtol=5e-3, atol=5e-3))

    print("KERNEL_OK")
</pallas_src>

<mosaic_0001>
module attributes {stable_mosaic.version = 11 : i64} {
  func.func @_linear_kernel(%arg0: i32, %arg1: i32, %arg2: memref<16x32xf32, #tpu.memory_space<vmem>>, %arg3: memref<32x32xf32, #tpu.memory_space<vmem>>, %arg4: memref<1x32xf32, #tpu.memory_space<vmem>>, %arg5: memref<16x32xf32, #tpu.memory_space<vmem>>) attributes {dimension_semantics = [#tpu.dimension_semantics<parallel>, #tpu.dimension_semantics<parallel>], iteration_bounds = array<i64: 1, 1>, scalar_prefetch = 0 : i64, scratch_operands = 0 : i64, tpu.core_type = #tpu.core_type<tc>, window_params = [{transform_indices = @transform_0, window_bounds = array<i64: 16, 32>}, {transform_indices = @transform_1, window_bounds = array<i64: 32, 32>}, {transform_indices = @transform_2, window_bounds = array<i64: 1, 32>}, {transform_indices = @transform_3, window_bounds = array<i64: 16, 32>}]} {
    %c0 = arith.constant 0 : index
    %c0_0 = arith.constant 0 : index
    %0 = vector.load %arg2[%c0, %c0_0] : memref<16x32xf32, #tpu.memory_space<vmem>>, vector<16x32xf32>
    %c0_1 = arith.constant 0 : index
    %c0_2 = arith.constant 0 : index
    %1 = vector.load %arg3[%c0_1, %c0_2] : memref<32x32xf32, #tpu.memory_space<vmem>>, vector<32x32xf32>
    %cst = arith.constant dense<0.000000e+00> : vector<16x32xf32>
    %2 = tpu.matmul %0, %1, %cst {dimension_numbers = #tpu.dot_dimension_numbers<[1], [0], [0], [1], [0, 0, 1, 1], [], []>} : vector<16x32xf32>, vector<32x32xf32>, vector<16x32xf32> -> vector<16x32xf32>
    %c0_3 = arith.constant 0 : index
    %c0_4 = arith.constant 0 : index
    %3 = vector.load %arg4[%c0_3, %c0_4] : memref<1x32xf32, #tpu.memory_space<vmem>>, vector<1x32xf32>
    %4 = vector.broadcast %3 : vector<1x32xf32> to vector<16x32xf32>
    %5 = arith.addf %2, %4 : vector<16x32xf32>
    %c0_5 = arith.constant 0 : index
    %c0_6 = arith.constant 0 : index
    %6 = vector.load %arg5[%c0_5, %c0_6] : memref<16x32xf32, #tpu.memory_space<vmem>>, vector<16x32xf32>
    tpu.vector_store %arg5[%c0_5, %c0_6], %5 {strides = array<i32>} : memref<16x32xf32, #tpu.memory_space<vmem>>, vector<16x32xf32>,
    return
  }
  func.func @transform_0(%arg0: i32, %arg1: i32) -> (i32, i32) {
    %c0_i32 = arith.constant 0 : i32
    %c0_i32_0 = arith.constant 0 : i32
    return %arg0, %c0_i32 : i32, i32
  }
  func.func @transform_1(%arg0: i32, %arg1: i32) -> (i32, i32) {
    %c0_i32 = arith.constant 0 : i32
    %c0_i32_0 = arith.constant 0 : i32
    return %c0_i32, %arg1 : i32, i32
  }
  func.func @transform_2(%arg0: i32, %arg1: i32) -> (i32, i32) {
    %c0_i32 = arith.constant 0 : i32
    %c0_i32_0 = arith.constant 0 : i32
    return %c0_i32, %arg1 : i32, i32
  }
  func.func @transform_3(%arg0: i32, %arg1: i32) -> (i32, i32) {
    %c0_i32 = arith.constant 0 : i32
    return %arg0, %arg1 : i32, i32
  }
}

</mosaic_0001>

<bundles_post_ra>
// kernel: tpu_custom_call.1
= control target key start
LH: loop header
LB: loop body
LE: loop exit
PB: predicated region body
PF: predicated region fallthrough
CT: control target
= control target key end

     0   :  { %8 = vsyncpa [#allocation3], 0  ;;  %s340_s0 = inlined_call_operand.hbm [shape: f32[16,32], index: 0, kind: input, shape index: {}]   ;;  %s341_s1 = inlined_call_operand.hbm [shape: f32[32,32], index: 1, kind: input, shape index: {}]   ;;  %s342_s2 = inlined_call_operand.vmem [shape: f32[1,32], index: 2, kind: input, shape index: {}]   ;;  %s343_s3 = inlined_call_operand.hbm [shape: f32[16,32], index: 3, kind: output, shape index: {}]  }
   0x1   :  { %9 = vsyncpa [#allocation6], 0 }
   0x2   :  { %10 = vsyncpa [#allocation4], 0  ;;  %s263_s12 = smov [#allocation2]   ;;  %s191_s16 = scalar_lea.hbm %s340_s0, 256 }
   0x3   :  { %s16_s13 = sshll.u32 %s263_s12, 4  ;;  %p192_p0 = scmp.ne.s32.totalorder %s340_s0, %s191_s16  ;;  %s17_s13 = int_to_ptr.vmem [resolvable:$true] %s16_s13 }
   0x4   :  { %p195_p1 = scmp.lt.u32.totalorder %s191_s16, %s340_s0 }
   0x6   :  { %p197_p2 = pnand %p195_p1, %p192_p0 }
   0x8   :  { %200 = shalt.err (!%p197_p2)
}
   0x9   :  { %s201_s21 = scalar_lea.vmem %s17_s13, 256  ;;  %p206_p4 = scmp.lt.s32.totalorder %s17_s13, %s17_s13 }
   0xa   :  { %p202_p3 = scmp.ne.s32.totalorder %s17_s13, %s201_s21  ;;  %p207_p5 = scmp.lt.s32.totalorder %s201_s21, %s201_s21 }
   0xc   :  { %p208_p6 = por %p207_p5, %p206_p4 }
   0xe   :  { %p209_p7 = pnand %p208_p6, %p202_p3 }
  0x10   :  { %212 = shalt.err (!%p209_p7)
}
  0x11   :  { %s264_s22 = smov 128   ;;  %s265_s23 = smov 8  }
  0x12   :  { %22 = dma.hbm_to_vmem [thread:$0]  %s340_s0, 256, %s17_s13, [#allocation3], %s264_s22, %s264_s22, %s265_s23  }
  0x13   :  { %s266_s26 = smov [#allocation5]   ;;  %s213_s30 = scalar_lea.hbm %s341_s1, 512 }
  0x14   :  { %s28_s27 = sshll.u32 %s266_s26, 4  ;;  %p214_p8 = scmp.ne.s32.totalorder %s341_s1, %s213_s30  ;;  %s29_s27 = int_to_ptr.vmem [resolvable:$true] %s28_s27 }
  0x15   :  { %p217_p9 = scmp.lt.u32.totalorder %s213_s30, %s341_s1 }
  0x17   :  { %p219_p10 = pnand %p217_p9, %p214_p8 }
  0x19   :  { %222 = shalt.err (!%p219_p10)
}
  0x1a   :  { %s223_s8 = scalar_lea.vmem %s29_s27, 512  ;;  %p228_p12 = scmp.lt.s32.totalorder %s29_s27, %s29_s27 }
  0x1b   :  { %p224_p11 = scmp.ne.s32.totalorder %s29_s27, %s223_s8  ;;  %p229_p13 = scmp.lt.s32.totalorder %s223_s8, %s223_s8 }
  0x1d   :  { %p230_p0 = por %p229_p13, %p228_p12 }
  0x1f   :  { %p231_p1 = pnand %p230_p0, %p224_p11 }
  0x21   :  { %234 = shalt.err (!%p231_p1)
}
  0x22   :  { %34 = dma.hbm_to_vmem [thread:$0]  %s341_s1, 512, %s29_s27, [#allocation6], %s264_s22, %s264_s22, %s265_s23  }
  0x23   :  { %257 = dma.done.wait [#allocation3], 256  }
  0x24   :  { %258 = vsyncadd [#allocation3], 4294967040 }
  0x25   :  { %259 = dma.done.wait [#allocation6], 512  }
  0x26   :  { %260 = vsyncadd [#allocation6], 4294966784  ;;  %vm56_vm0 = vcmask 261120   ;;  %v45_v0 = vld [vmem:[#allocation5] sm:$0xff]  ;;  %v46_v1 = vld [vmem:[#allocation5 + $0x8] sm:$0xff]  ;;  %s267_s11 = smov [#allocation7]  }
  0x27   :  { %v47_v2 = vld [vmem:[#allocation5 + $0x10] sm:$0xff]  ;;  %v178_v3 = vpack.c.bf16 %v46_v1, %v45_v0  ;;  %v48_v4 = vld [vmem:[#allocation5 + $0x18] sm:$0xff]  ;;  %s145_s12 = sshll.u32 %s267_s11, 4  ;;  %s146_s12 = int_to_ptr.vmem [resolvable:$true] %s145_s12 }
  0x28   :  { %v43_v5 = vld [vmem:[#allocation2] sm:$0xff]  ;;  %v182_v6 = vpack.c.bf16 %v48_v4, %v47_v2  ;;  %v44_v7 = vld [vmem:[#allocation2 + $0x8] sm:$0xff]  ;;  %s235_s13 = scalar_lea.vmem %s146_s12, 256  ;;  %p240_p3 = scmp.lt.s32.totalorder %s146_s12, %s146_s12 }
  0x29   :  { %175 = vmatprep.mubr.msk.f32.mxu0 %vm56_vm0, %v43_v5  ;;  %179 = vmatprep.subr.bf16.mxu0 %v178_v3  ;;  %v158_v8 = vld [vmem:[%s342_s2] ss:$0 sm:$0xff]  ;;  %p236_p2 = scmp.ne.s32.totalorder %s146_s12, %s235_s13  ;;  %p241_p4 = scmp.lt.s32.totalorder %s235_s13, %s235_s13 }
  0x2a   :  { %181 = vmatpush3.bf16.msra.mxu0 %v178_v3 }
  0x2b   :  { %183 = vmatprep.subr.bf16.mxu0 %v182_v6  ;;  %p242_p5 = por %p241_p4, %p240_p3 }
  0x2d   :  { %p243_p6 = pnand %p242_p5, %p236_p2 }
  0x2e   :  { %185 = vmatpush3.bf16.msra.mxu0 %v182_v6 }
  0x31   :  { %176 = vmatmul.mubr.msk.f32.vlgmr.msra.gmra.mrb[0].mxu0 %vm56_vm0, %v44_v7 }
 0x104   :  { %v177_v9 = vpop.f32.mrb[0].mxu0 }
 0x105   :  { %v135_v10 = vadd.f32 %v177_v9, %v158_v8  ;;  %v129_v11 = vpop.f32.mrb[1].mxu0 }
 0x106   :  { %v130_v12 = vadd.f32 %v158_v8, %v129_v11 }
 0x107   :  { %139 = vst.msk [vmem:[#allocation7 + $0x8] sm:$0xff] %vm56_vm0, %v135_v10 }
 0x108   :  { %138 = vst.msk [vmem:[#allocation7] sm:$0xff] %vm56_vm0, %v130_v12 }
 0x109   :  { %246 = shalt.err (!%p243_p6)
}
 0x10a   :  { %s247_s15 = scalar_lea.hbm %s343_s3, 256 }
 0x10b   :  { %p248_p7 = scmp.ne.s32.totalorder %s343_s3, %s247_s15  ;;  %p251_p8 = scmp.lt.u32.totalorder %s247_s15, %s343_s3 }
 0x10d   :  { %p253_p9 = pnand %p251_p8, %p248_p7 }
 0x10f   :  { %256 = shalt.err (!%p253_p9)
}
 0x110   :  { %151 = dma.vmem_to_hbm [thread:$0]  %s146_s12, 256, %s343_s3, [#allocation4], %s264_s22, %s264_s22, %s265_s23  }
 0x111   :  { %261 = dma.done.wait [#allocation4], 256  }
 0x112   :  { %262 = vsyncadd [#allocation4], 4294967040 }
 0x113   :  { %155 = vsyncpa [#allocation3], 1 }
 0x114   :  { %156 = vsyncpa [#allocation6], 1 }
 0x115   :  { %157 = vsyncpa [#allocation4], 1 }

</bundles_post_ra>
